<compile_context>
chip_gen: v7x
topology: tpu7x:2x2x1
jax: 0.10.0
libtpu: 0.0.40
codegen_flags: <defaults>
</compile_context>

<pallas_src>
import math

import jax
import jax.numpy as jnp
from jax.experimental import pallas as pl
from jax.experimental.pallas import tpu as pltpu

EPS = 1e-9


def _standardize_kernel(x_ref, mean_ref, inv_ref, o_ref):
    # Pure elementwise hot path: (x - mean) * inv_std, mean/inv broadcast over rows.
    # f32 compute is free filler under the load/store bottleneck (no-op for f32 inputs).
    x = x_ref[...].astype(jnp.float32)
    o_ref[...] = ((x - mean_ref[...]) * inv_ref[...]).astype(o_ref.dtype)


def standardize_sf_forward(
    representation,
    sf_mean,
    sf_stddev,
    *,
    eps=EPS,
    target_block_bytes=2 * 1024 * 1024,
):
    """Pallas implementation of StandardizeSF.forward's standardization stage.

    representation: (B, A, F)   -- output of SFBlock
    sf_mean, sf_stddev: (F,)
    returns: (B, A, F) with representation's dtype
    """
    B, A, F = representation.shape
    rows = B * A
    dtype = representation.dtype
    itemsize = jnp.dtype(dtype).itemsize

    # Precompute the reciprocal once (plain XLA, outside the kernel).
    mean_f32 = sf_mean.astype(jnp.float32)
    inv_std = 1.0 / (sf_stddev.astype(jnp.float32) + jnp.float32(eps))

    # Lane-dense folding: fold k original rows into one folded row so the last
    # (lane) dimension is a multiple of 128.
    k = 128 // math.gcd(F, 128)
    F_fold = k * F  # multiple of 128

    # Minimal padding: only make the row count a multiple of k (no full-grid pad).
    rows_k = pl.cdiv(rows, k) * k
    x2d = representation.reshape(rows, F)
    if rows_k != rows:
        x2d = jnp.pad(x2d, ((0, rows_k - rows), (0, 0)))
    folded_rows = rows_k // k
    x_fold = x2d.reshape(folded_rows, F_fold)  # contiguous reshape: no copy

    # Row-tile size: ~target_block_bytes, multiple of 8 sublanes; for small
    # inputs use a single full-extent block (always layout-legal). Ragged last
    # block on large inputs is clipped by Pallas.
    rt = target_block_bytes // (F_fold * itemsize)
    rt = max(8, (rt // 8) * 8)
    if folded_rows <= rt:
        rt = folded_rows
    grid_rows = pl.cdiv(folded_rows, rt)

    # Per-lane statistics, tiled to match the folded lane layout.
    mean_fold = jnp.tile(mean_f32, (k,)).reshape(1, F_fold)
    inv_fold = jnp.tile(inv_std, (k,)).reshape(1, F_fold)

    out_fold = pl.pallas_call(
        _standardize_kernel,
        out_shape=jax.ShapeDtypeStruct((folded_rows, F_fold), dtype),
        grid_spec=pltpu.PrefetchScalarGridSpec(
            num_scalar_prefetch=0,
            grid=(grid_rows,),
            in_specs=[
                pl.BlockSpec((rt, F_fold), lambda i: (i, 0)),
                # Full-array blocks, index_map independent of i -> resident, not re-fetched.
                pl.BlockSpec((1, F_fold), lambda i: (0, 0)),
                pl.BlockSpec((1, F_fold), lambda i: (0, 0)),
            ],
            out_specs=pl.BlockSpec((rt, F_fold), lambda i: (i, 0)),
        ),
        compiler_params=pltpu.CompilerParams(
            dimension_semantics=("parallel",),
            vmem_limit_bytes=32 * 1024 * 1024,
        ),
    )(x_fold, mean_fold, inv_fold)

    out2d = out_fold.reshape(rows_k, F)
    if rows_k != rows:
        out2d = out2d[:rows]
    return out2d.reshape(B, A, F)


def sf_block_stub(representation):
    # TODO(synk): stands in for SFBlock(inputs); identity on a precomputed descriptor tensor.
    return representation


if __name__ == "__main__":
    # Small, module-consistent shapes: batch=2 molecules, 8 atoms each, 32 symmetry functions.
    B, A, F = 2, 8, 32
    n_symfuncs = F

    key = jax.random.PRNGKey(0)
    representation = jax.random.normal(key, (B, A, F), dtype=jnp.float32)

    # Deterministic parameter init matching __init__ with data_loader=None.
    sf_mean = jnp.zeros((n_symfuncs,), dtype=jnp.float32)
    sf_stddev = jnp.ones((n_symfuncs,), dtype=jnp.float32)

    rep = sf_block_stub(representation)
    out = standardize_sf_forward(rep, sf_mean, sf_stddev)
    out = jax.block_until_ready(out)

    # Reference check (plain JAX) for the standardize semantics.
    ref = (rep - sf_mean[None, None, :]) / (sf_stddev[None, None, :] + EPS)
    assert out.shape == (B, A, F)
    assert out.dtype == jnp.float32
    assert jnp.allclose(out, ref, atol=1e-5, rtol=1e-5)

    print("KERNEL_OK")
</pallas_src>

<mosaic_0001>
module attributes {stable_mosaic.version = 11 : i64} {
  func.func @_standardize_kernel(%arg0: i32, %arg1: memref<4x128xf32, #tpu.memory_space<vmem>>, %arg2: memref<1x128xf32, #tpu.memory_space<vmem>>, %arg3: memref<1x128xf32, #tpu.memory_space<vmem>>, %arg4: memref<4x128xf32, #tpu.memory_space<vmem>>) attributes {dimension_semantics = [#tpu.dimension_semantics<parallel>], iteration_bounds = array<i64: 1>, scalar_prefetch = 0 : i64, scratch_operands = 0 : i64, tpu.core_type = #tpu.core_type<tc>, window_params = [{transform_indices = @transform_0, window_bounds = array<i64: 4, 128>}, {pipeline_mode = #tpu.pipeline_mode<synchronous>, transform_indices = @transform_1, window_bounds = array<i64: 1, 128>}, {pipeline_mode = #tpu.pipeline_mode<synchronous>, transform_indices = @transform_2, window_bounds = array<i64: 1, 128>}, {transform_indices = @transform_3, window_bounds = array<i64: 4, 128>}]} {
    %c0 = arith.constant 0 : index
    %c0_0 = arith.constant 0 : index
    %0 = vector.load %arg1[%c0, %c0_0] : memref<4x128xf32, #tpu.memory_space<vmem>>, vector<4x128xf32>
    %c0_1 = arith.constant 0 : index
    %c0_2 = arith.constant 0 : index
    %1 = vector.load %arg2[%c0_1, %c0_2] : memref<1x128xf32, #tpu.memory_space<vmem>>, vector<1x128xf32>
    %2 = vector.broadcast %1 : vector<1x128xf32> to vector<4x128xf32>
    %3 = arith.subf %0, %2 : vector<4x128xf32>
    %c0_3 = arith.constant 0 : index
    %c0_4 = arith.constant 0 : index
    %4 = vector.load %arg3[%c0_3, %c0_4] : memref<1x128xf32, #tpu.memory_space<vmem>>, vector<1x128xf32>
    %5 = vector.broadcast %4 : vector<1x128xf32> to vector<4x128xf32>
    %6 = arith.mulf %3, %5 : vector<4x128xf32>
    %c0_5 = arith.constant 0 : index
    %c0_6 = arith.constant 0 : index
    %7 = vector.load %arg4[%c0_5, %c0_6] : memref<4x128xf32, #tpu.memory_space<vmem>>, vector<4x128xf32>
    tpu.vector_store %arg4[%c0_5, %c0_6], %6 {strides = array<i32>} : memref<4x128xf32, #tpu.memory_space<vmem>>, vector<4x128xf32>,
    return
  }
  func.func @transform_0(%arg0: i32) -> (i32, i32) {
    %c0_i32 = arith.constant 0 : i32
    %c0_i32_0 = arith.constant 0 : i32
    return %arg0, %c0_i32 : i32, i32
  }
  func.func @transform_1(%arg0: i32) -> (i32, i32) {
    %c0_i32 = arith.constant 0 : i32
    %c0_i32_0 = arith.constant 0 : i32
    %c0_i32_1 = arith.constant 0 : i32
    return %c0_i32, %c0_i32_0 : i32, i32
  }
  func.func @transform_2(%arg0: i32) -> (i32, i32) {
    %c0_i32 = arith.constant 0 : i32
    %c0_i32_0 = arith.constant 0 : i32
    %c0_i32_1 = arith.constant 0 : i32
    return %c0_i32, %c0_i32_0 : i32, i32
  }
  func.func @transform_3(%arg0: i32) -> (i32, i32) {
    %c0_i32 = arith.constant 0 : i32
    %c0_i32_0 = arith.constant 0 : i32
    return %arg0, %c0_i32 : i32, i32
  }
}

</mosaic_0001>

<bundles_post_ra>
// kernel: tpu_custom_call.1
= control target key start
LH: loop header
LB: loop body
LE: loop exit
PB: predicated region body
PF: predicated region fallthrough
CT: control target
= control target key end

     0   :  { %8 = vsyncpa [#allocation3], 0  ;;  %s164_s0 = inlined_call_operand.hbm [shape: f32[4,128], index: 0, kind: input, shape index: {}]   ;;  %s165_s1 = inlined_call_operand.vmem [shape: f32[1,128], index: 1, kind: input, shape index: {}]   ;;  %s166_s2 = inlined_call_operand.vmem [shape: f32[1,128], index: 2, kind: input, shape index: {}]   ;;  %s167_s3 = inlined_call_operand.hbm [shape: f32[4,128], index: 3, kind: output, shape index: {}]  }
   0x1   :  { %9 = vsyncpa [#allocation4], 0  ;;  %s112_s12 = smov [#allocation2]   ;;  %s64_s16 = scalar_lea.hbm %s164_s0, 64 }
   0x2   :  { %s16_s13 = sshll.u32 %s112_s12, 4  ;;  %p65_p0 = scmp.ne.s32.totalorder %s164_s0, %s64_s16  ;;  %s17_s13 = int_to_ptr.vmem [resolvable:$true] %s16_s13 }
   0x3   :  { %p68_p1 = scmp.lt.u32.totalorder %s64_s16, %s164_s0 }
   0x5   :  { %p70_p2 = pnand %p68_p1, %p65_p0 }
   0x7   :  { %73 = shalt.err (!%p70_p2)
}
   0x8   :  { %s74_s21 = scalar_lea.vmem %s17_s13, 64  ;;  %p79_p4 = scmp.lt.s32.totalorder %s17_s13, %s17_s13 }
   0x9   :  { %p75_p3 = scmp.ne.s32.totalorder %s17_s13, %s74_s21  ;;  %p80_p5 = scmp.lt.s32.totalorder %s74_s21, %s74_s21 }
   0xb   :  { %p81_p6 = por %p80_p5, %p79_p4 }
   0xd   :  { %p82_p7 = pnand %p81_p6, %p75_p3 }
   0xf   :  { %85 = shalt.err (!%p82_p7)
}
  0x10   :  { %19 = dma.hbm_to_vmem [thread:$0]  %s164_s0, 64, %s17_s13, [#allocation3]  }
  0x11   :  { %108 = dma.done.wait [#allocation3], 64  }
  0x12   :  { %109 = vsyncadd [#allocation3], 4294967232  ;;  %s113_s24 = smov [#allocation5]   ;;  %v27_v0 = vld [vmem:[#allocation2] sm:$0xf] }
  0x13   :  { %s51_s25 = sshll.u32 %s113_s24, 4  ;;  %v60_v1 = vld [vmem:[%s165_s1] ss:$0 sm:$0xff]  ;;  %s52_s25 = int_to_ptr.vmem [resolvable:$true] %s51_s25 }
  0x14   :  { %v61_v2 = vld [vmem:[%s166_s2] ss:$0 sm:$0xff]  ;;  %v35_v3 = vsub.f32 %v27_v0, %v60_v1  ;;  %s86_s30 = scalar_lea.vmem %s52_s25, 64  ;;  %p91_p9 = scmp.lt.s32.totalorder %s52_s25, %s52_s25 }
  0x15   :  { %p87_p8 = scmp.ne.s32.totalorder %s52_s25, %s86_s30  ;;  %p92_p10 = scmp.lt.s32.totalorder %s86_s30, %s86_s30 }
  0x16   :  { %v43_v4 = vmul.f32 %v61_v2, %v35_v3 }
  0x17   :  { %p93_p11 = por %p92_p10, %p91_p9 }
  0x18   :  { %44 = vst [vmem:[#allocation5] sm:$0xf] %v43_v4 }
  0x19   :  { %p94_p12 = pnand %p93_p11, %p87_p8 }
  0x1b   :  { %97 = shalt.err (!%p94_p12)
}
  0x1c   :  { %s98_s5 = scalar_lea.hbm %s167_s3, 64 }
  0x1d   :  { %p99_p13 = scmp.ne.s32.totalorder %s167_s3, %s98_s5  ;;  %p102_p0 = scmp.lt.u32.totalorder %s98_s5, %s167_s3 }
  0x1f   :  { %p104_p1 = pnand %p102_p0, %p99_p13 }
  0x21   :  { %107 = shalt.err (!%p104_p1)
}
  0x22   :  { %54 = dma.vmem_to_hbm [thread:$0]  %s52_s25, 64, %s167_s3, [#allocation4]  }
  0x23   :  { %110 = dma.done.wait [#allocation4], 64  }
  0x24   :  { %111 = vsyncadd [#allocation4], 4294967232 }
  0x25   :  { %58 = vsyncpa [#allocation3], 1 }
  0x26   :  { %59 = vsyncpa [#allocation4], 1 }

</bundles_post_ra>
